<compile_context>
chip_gen: v5e
topology: v5e:2x2
jax: 0.10.0
libtpu: 0.0.40
codegen_flags: <defaults>
</compile_context>

<pallas_src>
import functools

import jax
import jax.numpy as jnp
import numpy as np
from jax.experimental import pallas as pl
from jax.experimental.pallas import tpu as pltpu


class Args:
    dim = 64
    head_dim = 16
    n_heads = 4
    n_kv_heads = 2
    hidden_dim = 128
    norm_eps = 1e-5
    rope_theta = 10000.0


def _rope_tables(seq_len, head_dim, theta):
    """cos/sin tables matching the PyTorch RoPE (emb = cat(freqs, freqs))."""
    inv_freq = 1.0 / (theta ** (np.arange(0, head_dim, 2, dtype=np.float32) / head_dim))
    t = np.arange(seq_len, dtype=np.float32)
    freqs = np.einsum("i,j->ij", t, inv_freq)
    emb = np.concatenate([freqs, freqs], axis=-1)          # (L, D)
    return np.cos(emb).astype(np.float32), np.sin(emb).astype(np.float32)


def _interleave_rotation(head_dim):
    """R such that (x @ R)[2i] = -x[2i+1], (x @ R)[2i+1] = x[2i]."""
    R = np.zeros((head_dim, head_dim), np.float32)
    even = np.arange(0, head_dim, 2)
    R[even + 1, even] = -1.0
    R[even, even + 1] = 1.0
    return R


def transformer_block_kernel(
    x_ref, wq_ref, wqr_ref, wk_ref, wkr_ref, wv_ref, wo_ref,
    w1_ref, w2_ref, w3_ref, g_attn_ref, g_ffn_ref,
    cos_q_ref, sin_q_ref, cos_k_ref, sin_k_ref,
    out_ref, k_out_ref, v_out_ref,
    o_buf,
    *, n_heads, n_kv_heads, head_dim, eps,
):
    rep = n_heads // n_kv_heads
    D = head_dim

    x = x_ref[0]                                          # (L, dim) f32

    def rmsnorm(v, g):
        # f32 VPU math; rsqrt goes to the EUP slot.
        return v * jax.lax.rsqrt(jnp.mean(v * v, axis=-1, keepdims=True) + eps) * g

    xn = rmsnorm(x, g_attn_ref[...]).astype(jnp.bfloat16)     # (L, dim) bf16

    # --- QKV (+ pre-rotated) projections: lane-dense bf16 MXU matmuls --------
    q = jnp.dot(xn, wq_ref[...], preferred_element_type=jnp.float32)    # (L, Hq*D)
    qr = jnp.dot(xn, wqr_ref[...], preferred_element_type=jnp.float32)  # (L, Hq*D)
    k = jnp.dot(xn, wk_ref[...], preferred_element_type=jnp.float32)    # (L, Hk*D)
    kr = jnp.dot(xn, wkr_ref[...], preferred_element_type=jnp.float32)  # (L, Hk*D)
    v = jnp.dot(xn, wv_ref[...], preferred_element_type=jnp.float32)    # (L, Hk*D)

    # --- RoPE on full slabs: pure VPU (rotation folded into wqr / wkr) -------
    q_rope = q * cos_q_ref[...] + qr * sin_q_ref[...]     # scale folded into wq
    k_rope = k * cos_k_ref[...] + kr * sin_k_ref[...]

    # lane-dense, un-repeated KV cache writeback
    k_out_ref[0] = k_rope
    v_out_ref[0] = v

    qb = q_rope.astype(jnp.bfloat16)
    kb = k_rope.astype(jnp.bfloat16)
    vb = v.astype(jnp.bfloat16)

    # --- attention: per-head softmax(QK^T)V staged into o_buf ----------------
    for h in range(n_heads):                              # static unroll (small)
        kv = h // rep
        qh = qb[:, h * D:(h + 1) * D]                     # (L, D)
        kh = kb[:, kv * D:(kv + 1) * D]                   # (L, D)
        vh = vb[:, kv * D:(kv + 1) * D]                   # (L, D)

        s = jax.lax.dot_general(qh, kh, (((1,), (1,)), ((), ())),
                                preferred_element_type=jnp.float32)   # (L, L) f32
        s = s - jnp.max(s, axis=-1, keepdims=True)
        p = jnp.exp(s)
        p = p * pl.reciprocal(jnp.sum(p, axis=-1, keepdims=True), approx=True)

        oh = jnp.dot(p.astype(jnp.bfloat16), vh,
                     preferred_element_type=jnp.float32)              # (L, D)
        o_buf[:, h * D:(h + 1) * D] = oh

    # --- single output projection across all heads ---------------------------
    attn = jnp.dot(o_buf[...].astype(jnp.bfloat16), wo_ref[...],
                   preferred_element_type=jnp.float32)                # (L, dim)
    h_res = x + attn

    # --- SiLU-gated FFN -------------------------------------------------------
    hn = rmsnorm(h_res, g_ffn_ref[...]).astype(jnp.bfloat16)
    a1 = jnp.dot(hn, w1_ref[...], preferred_element_type=jnp.float32)
    a3 = jnp.dot(hn, w3_ref[...], preferred_element_type=jnp.float32)
    ff = jnp.dot((jax.nn.silu(a1) * a3).astype(jnp.bfloat16), w2_ref[...],
                 preferred_element_type=jnp.float32)
    out_ref[0] = h_res + ff


def transformer_block(x, params, args):
    B, L, dim = x.shape
    Hq, Hk, D = args.n_heads, args.n_kv_heads, args.head_dim
    rep = Hq // Hk
    hid = args.hidden_dim
    scale = D ** -0.5
    f32, bf16 = jnp.float32, jnp.bfloat16

    # ---- one-time parameter prep (outside the kernel) -----------------------
    cos_emb, sin_emb = _rope_tables(L, D, args.rope_theta)
    R = _interleave_rotation(D)
    Rq = np.kron(np.eye(Hq, dtype=np.float32), R)       # block-diag per head
    Rk = np.kron(np.eye(Hk, dtype=np.float32), R)

    wq = np.asarray(params["wq_t"], np.float32) * scale  # fold 1/sqrt(D) into wq
    wk = np.asarray(params["wk_t"], np.float32)

    weights = [
        jnp.asarray(wq, bf16),                            # wq   (scaled)
        jnp.asarray(wq @ Rq, bf16),                       # wq_rot (rotation folded)
        jnp.asarray(wk, bf16),                            # wk
        jnp.asarray(wk @ Rk, bf16),                       # wk_rot
        jnp.asarray(params["wv_t"], bf16),
        jnp.asarray(params["wo_t"], bf16),
        jnp.asarray(params["w1_t"], bf16),
        jnp.asarray(params["w2_t"], bf16),
        jnp.asarray(params["w3_t"], bf16),
    ]
    cos_q = jnp.asarray(np.tile(cos_emb, (1, Hq)), f32)   # (L, Hq*D)
    sin_q = jnp.asarray(np.tile(sin_emb, (1, Hq)), f32)
    cos_k = jnp.asarray(np.tile(cos_emb, (1, Hk)), f32)   # (L, Hk*D)
    sin_k = jnp.asarray(np.tile(sin_emb, (1, Hk)), f32)

    inputs = (x, *weights, params["g_attn"], params["g_ffn"],
              cos_q, sin_q, cos_k, sin_k)

    def replicated(a):
        nd = a.ndim
        return pl.BlockSpec(a.shape, lambda b, _nd=nd: (0,) * _nd)

    in_specs = [pl.BlockSpec((1, L, dim), lambda b: (b, 0, 0))]
    in_specs += [replicated(a) for a in inputs[1:]]

    out_specs = (pl.BlockSpec((1, L, dim), lambda b: (b, 0, 0)),
                 pl.BlockSpec((1, L, Hk * D), lambda b: (b, 0, 0)),
                 pl.BlockSpec((1, L, Hk * D), lambda b: (b, 0, 0)))
    out_shape = (jax.ShapeDtypeStruct((B, L, dim), f32),
                 jax.ShapeDtypeStruct((B, L, Hk * D), f32),
                 jax.ShapeDtypeStruct((B, L, Hk * D), f32))

    flops = 2 * B * L * (dim * (2 * Hq * D + 3 * Hk * D)   # q, qr, k, kr, v
                         + 2 * Hq * L * D                  # scores + PV
                         + Hq * D * dim                    # output projection
                         + 3 * dim * hid)                  # FFN
    transcendentals = B * (Hq * L * L + L * hid + 2 * L)
    bytes_accessed = sum(int(np.prod(a.shape)) * a.dtype.itemsize for a in inputs)
    bytes_accessed += sum(int(np.prod(s.shape)) * 4 for s in out_shape)

    kernel = functools.partial(
        transformer_block_kernel,
        n_heads=Hq, n_kv_heads=Hk, head_dim=D, eps=args.norm_eps)

    out, k_flat, v_flat = pl.pallas_call(
        kernel,
        grid=(B,),
        in_specs=in_specs,
        out_specs=out_specs,
        out_shape=out_shape,
        scratch_shapes=[pltpu.VMEM((L, Hq * D), jnp.float32)],   # per-head staging
        compiler_params=pltpu.CompilerParams(
            dimension_semantics=("parallel",)),
        cost_estimate=pl.CostEstimate(
            flops=int(flops),
            transcendentals=int(transcendentals),
            bytes_accessed=int(bytes_accessed)),
    )(*inputs)

    # Wrapper-side layout plumbing only: un-flatten and repeat K/V to the
    # reference (B, n_heads, L, head_dim) cache layout.
    k = jnp.repeat(k_flat.reshape(B, L, Hk, D).transpose(0, 2, 1, 3), rep, axis=1)
    v = jnp.repeat(v_flat.reshape(B, L, Hk, D).transpose(0, 2, 1, 3), rep, axis=1)
    return out, (k, v)


def reference(x, params, args):
    """Pure-JAX f32 reference mirroring the PyTorch forward (cache=None)."""
    eps = args.norm_eps
    B, L, dim = x.shape
    Hq, Hk, D = args.n_heads, args.n_kv_heads, args.head_dim
    rep = Hq // Hk
    scale = D ** -0.5

    cos_emb, sin_emb = _rope_tables(L, D, args.rope_theta)
    cos, sin = jnp.asarray(cos_emb), jnp.asarray(sin_emb)
    R = jnp.asarray(_interleave_rotation(D))

    def rmsnorm(v, g):
        return v / jnp.sqrt(jnp.mean(v * v, axis=-1, keepdims=True) + eps) * g

    def rope(v):  # v: (..., L, D)
        return v * cos + jnp.einsum('...ld,de->...le', v, R) * sin

    xn = rmsnorm(x, params['g_attn'])
    q = (xn @ params['wq_t']).reshape(B, L, Hq, D).transpose(0, 2, 1, 3)
    k = (xn @ params['wk_t']).reshape(B, L, Hk, D).transpose(0, 2, 1, 3)
    v = (xn @ params['wv_t']).reshape(B, L, Hk, D).transpose(0, 2, 1, 3)
    k = jnp.repeat(k, rep, axis=1)
    v = jnp.repeat(v, rep, axis=1)
    q, k = rope(q), rope(k)
    scores = jax.nn.softmax(jnp.einsum('bhid,bhjd->bhij', q * scale, k), axis=-1)
    attn = jnp.einsum('bhij,bhjd->bhid', scores, v)
    attn = attn.transpose(0, 2, 1, 3).reshape(B, L, Hq * D)
    h = x + attn @ params['wo_t']
    hn = rmsnorm(h, params['g_ffn'])
    ff = (jax.nn.silu(hn @ params['w1_t']) * (hn @ params['w3_t'])) @ params['w2_t']
    return h + ff, (k, v)


if __name__ == "__main__":
    args = Args()
    B, L = 2, 8
    dim, D, Hq, Hk, hid = args.dim, args.head_dim, args.n_heads, args.n_kv_heads, args.hidden_dim

    key = jax.random.PRNGKey(0)
    ks = jax.random.split(key, 8)
    init = lambda k, shape: jax.random.normal(k, shape, jnp.float32) * 0.02

    params = {
        'wq_t': init(ks[0], (dim, Hq * D)),
        'wk_t': init(ks[1], (dim, Hk * D)),
        'wv_t': init(ks[2], (dim, Hk * D)),
        'wo_t': init(ks[3], (Hq * D, dim)),
        'w1_t': init(ks[4], (dim, hid)),
        'w2_t': init(ks[5], (hid, dim)),
        'w3_t': init(ks[6], (dim, hid)),
        'g_attn': jnp.ones((1, dim), jnp.float32),   # RMSNorm weights init to ones
        'g_ffn': jnp.ones((1, dim), jnp.float32),
    }
    x = jax.random.normal(ks[7], (B, L, dim), jnp.float32)

    out, (k_cache, v_cache) = transformer_block(x, params, args)
    jax.block_until_ready(out)
    jax.block_until_ready(k_cache)
    jax.block_until_ready(v_cache)

    ref_out, (ref_k, ref_v) = reference(x, params, args)
    assert np.allclose(np.asarray(out), np.asarray(ref_out), atol=2e-2, rtol=2e-2)
    assert np.allclose(np.asarray(k_cache), np.asarray(ref_k), atol=2e-2, rtol=2e-2)
    assert np.allclose(np.asarray(v_cache), np.asarray(ref_v), atol=2e-2, rtol=2e-2)
    print("KERNEL_OK")
</pallas_src>

<mosaic_0001>
module attributes {stable_mosaic.version = 11 : i64} {
  func.func @transformer_block_kernel(%arg0: i32, %arg1: memref<1x8x64xf32, #tpu.memory_space<vmem>>, %arg2: memref<64x64xbf16, #tpu.memory_space<vmem>>, %arg3: memref<64x64xbf16, #tpu.memory_space<vmem>>, %arg4: memref<64x32xbf16, #tpu.memory_space<vmem>>, %arg5: memref<64x32xbf16, #tpu.memory_space<vmem>>, %arg6: memref<64x32xbf16, #tpu.memory_space<vmem>>, %arg7: memref<64x64xbf16, #tpu.memory_space<vmem>>, %arg8: memref<64x128xbf16, #tpu.memory_space<vmem>>, %arg9: memref<128x64xbf16, #tpu.memory_space<vmem>>, %arg10: memref<64x128xbf16, #tpu.memory_space<vmem>>, %arg11: memref<1x64xf32, #tpu.memory_space<vmem>>, %arg12: memref<1x64xf32, #tpu.memory_space<vmem>>, %arg13: memref<8x64xf32, #tpu.memory_space<vmem>>, %arg14: memref<8x64xf32, #tpu.memory_space<vmem>>, %arg15: memref<8x32xf32, #tpu.memory_space<vmem>>, %arg16: memref<8x32xf32, #tpu.memory_space<vmem>>, %arg17: memref<1x8x64xf32, #tpu.memory_space<vmem>>, %arg18: memref<1x8x32xf32, #tpu.memory_space<vmem>>, %arg19: memref<1x8x32xf32, #tpu.memory_space<vmem>>, %arg20: memref<8x64xf32, #tpu.memory_space<vmem>>) attributes {dimension_semantics = [#tpu.dimension_semantics<parallel>], iteration_bounds = array<i64: 2>, scalar_prefetch = 0 : i64, scratch_operands = 1 : i64, tpu.core_type = #tpu.core_type<tc>, window_params = [{transform_indices = @transform_0, window_bounds = array<i64: 1, 8, 64>}, {pipeline_mode = #tpu.pipeline_mode<synchronous>, transform_indices = @transform_1, window_bounds = array<i64: 64, 64>}, {pipeline_mode = #tpu.pipeline_mode<synchronous>, transform_indices = @transform_2, window_bounds = array<i64: 64, 64>}, {pipeline_mode = #tpu.pipeline_mode<synchronous>, transform_indices = @transform_3, window_bounds = array<i64: 64, 32>}, {pipeline_mode = #tpu.pipeline_mode<synchronous>, transform_indices = @transform_4, window_bounds = array<i64: 64, 32>}, {pipeline_mode = #tpu.pipeline_mode<synchronous>, transform_indices = @transform_5, window_bounds = array<i64: 64, 32>}, {pipeline_mode = #tpu.pipeline_mode<synchronous>, transform_indices = @transform_6, window_bounds = array<i64: 64, 64>}, {pipeline_mode = #tpu.pipeline_mode<synchronous>, transform_indices = @transform_7, window_bounds = array<i64: 64, 128>}, {pipeline_mode = #tpu.pipeline_mode<synchronous>, transform_indices = @transform_8, window_bounds = array<i64: 128, 64>}, {pipeline_mode = #tpu.pipeline_mode<synchronous>, transform_indices = @transform_9, window_bounds = array<i64: 64, 128>}, {pipeline_mode = #tpu.pipeline_mode<synchronous>, transform_indices = @transform_10, window_bounds = array<i64: 1, 64>}, {pipeline_mode = #tpu.pipeline_mode<synchronous>, transform_indices = @transform_11, window_bounds = array<i64: 1, 64>}, {pipeline_mode = #tpu.pipeline_mode<synchronous>, transform_indices = @transform_12, window_bounds = array<i64: 8, 64>}, {pipeline_mode = #tpu.pipeline_mode<synchronous>, transform_indices = @transform_13, window_bounds = array<i64: 8, 64>}, {pipeline_mode = #tpu.pipeline_mode<synchronous>, transform_indices = @transform_14, window_bounds = array<i64: 8, 32>}, {pipeline_mode = #tpu.pipeline_mode<synchronous>, transform_indices = @transform_15, window_bounds = array<i64: 8, 32>}, {transform_indices = @transform_16, window_bounds = array<i64: 1, 8, 64>}, {transform_indices = @transform_17, window_bounds = array<i64: 1, 8, 32>}, {transform_indices = @transform_18, window_bounds = array<i64: 1, 8, 32>}]} {
    %c0 = arith.constant 0 : index
    %c0_0 = arith.constant 0 : index
    %c0_1 = arith.constant 0 : index
    %0 = vector.load %arg1[%c0, %c0_0, %c0_1] : memref<1x8x64xf32, #tpu.memory_space<vmem>>, vector<1x8x64xf32>
    %1 = vector.shape_cast %0 : vector<1x8x64xf32> to vector<8x64xf32>
    %c0_2 = arith.constant 0 : index
    %c0_3 = arith.constant 0 : index
    %2 = vector.load %arg11[%c0_2, %c0_3] : memref<1x64xf32, #tpu.memory_space<vmem>>, vector<1x64xf32>
    %3 = arith.mulf %1, %1 : vector<8x64xf32>
    %cst = arith.constant dense<0.000000e+00> : vector<8xf32>
    %4 = vector.multi_reduction <add>, %3, %cst [1] : vector<8x64xf32> to vector<8xf32>
    %5 = vector.shape_cast %4 : vector<8xf32> to vector<8x1xf32>
    %cst_4 = arith.constant 6.400000e+01 : f32
    %6 = vector.broadcast %cst_4 : f32 to vector<8x1xf32>
    %7 = arith.divf %5, %6 : vector<8x1xf32>
    %cst_5 = arith.constant 9.99999974E-6 : f32
    %8 = vector.broadcast %cst_5 : f32 to vector<8x1xf32>
    %9 = arith.addf %7, %8 : vector<8x1xf32>
    %10 = math.rsqrt %9 : vector<8x1xf32>
    %11 = vector.broadcast %10 : vector<8x1xf32> to vector<8x64xf32>
    %12 = arith.mulf %1, %11 : vector<8x64xf32>
    %13 = vector.broadcast %2 : vector<1x64xf32> to vector<8x64xf32>
    %14 = arith.mulf %12, %13 : vector<8x64xf32>
    %15 = arith.truncf %14 : vector<8x64xf32> to vector<8x64xbf16>
    %c0_6 = arith.constant 0 : index
    %c0_7 = arith.constant 0 : index
    %16 = vector.load %arg2[%c0_6, %c0_7] : memref<64x64xbf16, #tpu.memory_space<vmem>>, vector<64x64xbf16>
    %cst_8 = arith.constant dense<0.000000e+00> : vector<8x64xf32>
    %17 = tpu.matmul %15, %16, %cst_8 {dimension_numbers = #tpu.dot_dimension_numbers<[1], [0], [0], [1], [0, 0, 1, 1], [], []>} : vector<8x64xbf16>, vector<64x64xbf16>, vector<8x64xf32> -> vector<8x64xf32>
    %c0_9 = arith.constant 0 : index
    %c0_10 = arith.constant 0 : index
    %18 = vector.load %arg3[%c0_9, %c0_10] : memref<64x64xbf16, #tpu.memory_space<vmem>>, vector<64x64xbf16>
    %cst_11 = arith.constant dense<0.000000e+00> : vector<8x64xf32>
    %19 = tpu.matmul %15, %18, %cst_11 {dimension_numbers = #tpu.dot_dimension_numbers<[1], [0], [0], [1], [0, 0, 1, 1], [], []>} : vector<8x64xbf16>, vector<64x64xbf16>, vector<8x64xf32> -> vector<8x64xf32>
    %c0_12 = arith.constant 0 : index
    %c0_13 = arith.constant 0 : index
    %20 = vector.load %arg4[%c0_12, %c0_13] : memref<64x32xbf16, #tpu.memory_space<vmem>>, vector<64x32xbf16>
    %cst_14 = arith.constant dense<0.000000e+00> : vector<8x32xf32>
    %21 = tpu.matmul %15, %20, %cst_14 {dimension_numbers = #tpu.dot_dimension_numbers<[1], [0], [0], [1], [0, 0, 1, 1], [], []>} : vector<8x64xbf16>, vector<64x32xbf16>, vector<8x32xf32> -> vector<8x32xf32>
    %c0_15 = arith.constant 0 : index
    %c0_16 = arith.constant 0 : index
    %22 = vector.load %arg5[%c0_15, %c0_16] : memref<64x32xbf16, #tpu.memory_space<vmem>>, vector<64x32xbf16>
    %cst_17 = arith.constant dense<0.000000e+00> : vector<8x32xf32>
    %23 = tpu.matmul %15, %22, %cst_17 {dimension_numbers = #tpu.dot_dimension_numbers<[1], [0], [0], [1], [0, 0, 1, 1], [], []>} : vector<8x64xbf16>, vector<64x32xbf16>, vector<8x32xf32> -> vector<8x32xf32>
    %c0_18 = arith.constant 0 : index
    %c0_19 = arith.constant 0 : index
    %24 = vector.load %arg6[%c0_18, %c0_19] : memref<64x32xbf16, #tpu.memory_space<vmem>>, vector<64x32xbf16>
    %cst_20 = arith.constant dense<0.000000e+00> : vector<8x32xf32>
    %25 = tpu.matmul %15, %24, %cst_20 {dimension_numbers = #tpu.dot_dimension_numbers<[1], [0], [0], [1], [0, 0, 1, 1], [], []>} : vector<8x64xbf16>, vector<64x32xbf16>, vector<8x32xf32> -> vector<8x32xf32>
    %c0_21 = arith.constant 0 : index
    %c0_22 = arith.constant 0 : index
    %26 = vector.load %arg13[%c0_21, %c0_22] : memref<8x64xf32, #tpu.memory_space<vmem>>, vector<8x64xf32>
    %27 = arith.mulf %17, %26 : vector<8x64xf32>
    %c0_23 = arith.constant 0 : index
    %c0_24 = arith.constant 0 : index
    %28 = vector.load %arg14[%c0_23, %c0_24] : memref<8x64xf32, #tpu.memory_space<vmem>>, vector<8x64xf32>
    %29 = arith.mulf %19, %28 : vector<8x64xf32>
    %30 = arith.addf %27, %29 : vector<8x64xf32>
    %c0_25 = arith.constant 0 : index
    %c0_26 = arith.constant 0 : index
    %31 = vector.load %arg15[%c0_25, %c0_26] : memref<8x32xf32, #tpu.memory_space<vmem>>, vector<8x32xf32>
    %32 = arith.mulf %21, %31 : vector<8x32xf32>
    %c0_27 = arith.constant 0 : index
    %c0_28 = arith.constant 0 : index
    %33 = vector.load %arg16[%c0_27, %c0_28] : memref<8x32xf32, #tpu.memory_space<vmem>>, vector<8x32xf32>
    %34 = arith.mulf %23, %33 : vector<8x32xf32>
    %35 = arith.addf %32, %34 : vector<8x32xf32>
    %c0_29 = arith.constant 0 : index
    %c0_30 = arith.constant 0 : index
    %c0_31 = arith.constant 0 : index
    %36 = vector.load %arg18[%c0_29, %c0_30, %c0_31] : memref<1x8x32xf32, #tpu.memory_space<vmem>>, vector<1x8x32xf32>
    %37 = vector.shape_cast %36 : vector<1x8x32xf32> to vector<8x32xf32>
    %38 = vector.shape_cast %35 : vector<8x32xf32> to vector<1x8x32xf32>
    tpu.vector_store %arg18[%c0_29, %c0_30, %c0_31], %38 {strides = array<i32>} : memref<1x8x32xf32, #tpu.memory_space<vmem>>, vector<1x8x32xf32>,
    %c0_32 = arith.constant 0 : index
    %c0_33 = arith.constant 0 : index
    %c0_34 = arith.constant 0 : index
    %39 = vector.load %arg19[%c0_32, %c0_33, %c0_34] : memref<1x8x32xf32, #tpu.memory_space<vmem>>, vector<1x8x32xf32>
    %40 = vector.shape_cast %39 : vector<1x8x32xf32> to vector<8x32xf32>
    %41 = vector.shape_cast %25 : vector<8x32xf32> to vector<1x8x32xf32>
    tpu.vector_store %arg19[%c0_32, %c0_33, %c0_34], %41 {strides = array<i32>} : memref<1x8x32xf32, #tpu.memory_space<vmem>>, vector<1x8x32xf32>,
    %42 = arith.truncf %30 : vector<8x64xf32> to vector<8x64xbf16>
    %43 = arith.truncf %35 : vector<8x32xf32> to vector<8x32xbf16>
    %44 = arith.truncf %25 : vector<8x32xf32> to vector<8x32xbf16>
    %45 = vector.extract_strided_slice %42 {offsets = [0, 0], sizes = [8, 16], strides = [1, 1]} : vector<8x64xbf16> to vector<8x16xbf16>
    %46 = vector.extract_strided_slice %43 {offsets = [0, 0], sizes = [8, 16], strides = [1, 1]} : vector<8x32xbf16> to vector<8x16xbf16>
    %47 = vector.extract_strided_slice %44 {offsets = [0, 0], sizes = [8, 16], strides = [1, 1]} : vector<8x32xbf16> to vector<8x16xbf16>
    %cst_35 = arith.constant dense<0.000000e+00> : vector<8x8xf32>
    %48 = tpu.matmul %45, %46, %cst_35 {dimension_numbers = #tpu.dot_dimension_numbers<[1], [1], [0], [0], [0, 0, 1, 0], [], []>} : vector<8x16xbf16>, vector<8x16xbf16>, vector<8x8xf32> -> vector<8x8xf32>
    %cst_36 = arith.constant dense<0xFF800000> : vector<8xf32>
    %49 = vector.multi_reduction <maximumf>, %48, %cst_36 [1] : vector<8x8xf32> to vector<8xf32>
    %50 = vector.shape_cast %49 : vector<8xf32> to vector<8x1xf32>
    %51 = vector.broadcast %50 : vector<8x1xf32> to vector<8x8xf32>
    %52 = arith.subf %48, %51 : vector<8x8xf32>
    %53 = math.exp %52 : vector<8x8xf32>
    %cst_37 = arith.constant dense<0.000000e+00> : vector<8xf32>
    %54 = vector.multi_reduction <add>, %53, %cst_37 [1] : vector<8x8xf32> to vector<8xf32>
    %55 = vector.shape_cast %54 : vector<8xf32> to vector<8x1xf32>
    %56 = tpu.reciprocal %55 {approx = true} : vector<8x1xf32> -> vector<8x1xf32>
    %57 = vector.broadcast %56 : vector<8x1xf32> to vector<8x8xf32>
    %58 = arith.mulf %53, %57 : vector<8x8xf32>
    %59 = arith.truncf %58 : vector<8x8xf32> to vector<8x8xbf16>
    %cst_38 = arith.constant dense<0.000000e+00> : vector<8x16xf32>
    %60 = tpu.matmul %59, %47, %cst_38 {dimension_numbers = #tpu.dot_dimension_numbers<[1], [0], [0], [1], [0, 0, 1, 1], [], []>} : vector<8x8xbf16>, vector<8x16xbf16>, vector<8x16xf32> -> vector<8x16xf32>
    %c0_39 = arith.constant 0 : index
    %c0_40 = arith.constant 0 : index
    %61 = vector.load %arg20[%c0_39, %c0_40] : memref<8x64xf32, #tpu.memory_space<vmem>>, vector<8x16xf32>
    tpu.vector_store %arg20[%c0_39, %c0_40], %60 {strides = array<i32>} : memref<8x64xf32, #tpu.memory_space<vmem>>, vector<8x16xf32>,
    %62 = vector.extract_strided_slice %42 {offsets = [0, 16], sizes = [8, 16], strides = [1, 1]} : vector<8x64xbf16> to vector<8x16xbf16>
    %63 = vector.extract_strided_slice %43 {offsets = [0, 0], sizes = [8, 16], strides = [1, 1]} : vector<8x32xbf16> to vector<8x16xbf16>
    %64 = vector.extract_strided_slice %44 {offsets = [0, 0], sizes = [8, 16], strides = [1, 1]} : vector<8x32xbf16> to vector<8x16xbf16>
    %cst_41 = arith.constant dense<0.000000e+00> : vector<8x8xf32>
    %65 = tpu.matmul %62, %63, %cst_41 {dimension_numbers = #tpu.dot_dimension_numbers<[1], [1], [0], [0], [0, 0, 1, 0], [], []>} : vector<8x16xbf16>, vector<8x16xbf16>, vector<8x8xf32> -> vector<8x8xf32>
    %cst_42 = arith.constant dense<0xFF800000> : vector<8xf32>
    %66 = vector.multi_reduction <maximumf>, %65, %cst_42 [1] : vector<8x8xf32> to vector<8xf32>
    %67 = vector.shape_cast %66 : vector<8xf32> to vector<8x1xf32>
    %68 = vector.broadcast %67 : vector<8x1xf32> to vector<8x8xf32>
    %69 = arith.subf %65, %68 : vector<8x8xf32>
    %70 = math.exp %69 : vector<8x8xf32>
    %cst_43 = arith.constant dense<0.000000e+00> : vector<8xf32>
    %71 = vector.multi_reduction <add>, %70, %cst_43 [1] : vector<8x8xf32> to vector<8xf32>
    %72 = vector.shape_cast %71 : vector<8xf32> to vector<8x1xf32>
    %73 = tpu.reciprocal %72 {approx = true} : vector<8x1xf32> -> vector<8x1xf32>
    %74 = vector.broadcast %73 : vector<8x1xf32> to vector<8x8xf32>
    %75 = arith.mulf %70, %74 : vector<8x8xf32>
    %76 = arith.truncf %75 : vector<8x8xf32> to vector<8x8xbf16>
    %cst_44 = arith.constant dense<0.000000e+00> : vector<8x16xf32>
    %77 = tpu.matmul %76, %64, %cst_44 {dimension_numbers = #tpu.dot_dimension_numbers<[1], [0], [0], [1], [0, 0, 1, 1], [], []>} : vector<8x8xbf16>, vector<8x16xbf16>, vector<8x16xf32> -> vector<8x16xf32>
    %c0_45 = arith.constant 0 : index
    %c16 = arith.constant 16 : index
    %78 = vector.load %arg20[%c0_45, %c16] : memref<8x64xf32, #tpu.memory_space<vmem>>, vector<8x16xf32>
    tpu.vector_store %arg20[%c0_45, %c16], %77 {strides = array<i32>} : memref<8x64xf32, #tpu.memory_space<vmem>>, vector<8x16xf32>,
    %79 = vector.extract_strided_slice %42 {offsets = [0, 32], sizes = [8, 16], strides = [1, 1]} : vector<8x64xbf16> to vector<8x16xbf16>
    %80 = vector.extract_strided_slice %43 {offsets = [0, 16], sizes = [8, 16], strides = [1, 1]} : vector<8x32xbf16> to vector<8x16xbf16>
    %81 = vector.extract_strided_slice %44 {offsets = [0, 16], sizes = [8, 16], strides = [1, 1]} : vector<8x32xbf16> to vector<8x16xbf16>
    %cst_46 = arith.constant dense<0.000000e+00> : vector<8x8xf32>
    %82 = tpu.matmul %79, %80, %cst_46 {dimension_numbers = #tpu.dot_dimension_numbers<[1], [1], [0], [0], [0, 0, 1, 0], [], []>} : vector<8x16xbf16>, vector<8x16xbf16>, vector<8x8xf32> -> vector<8x8xf32>
    %cst_47 = arith.constant dense<0xFF800000> : vector<8xf32>
    %83 = vector.multi_reduction <maximumf>, %82, %cst_47 [1] : vector<8x8xf32> to vector<8xf32>
    %84 = vector.shape_cast %83 : vector<8xf32> to vector<8x1xf32>
    %85 = vector.broadcast %84 : vector<8x1xf32> to vector<8x8xf32>
    %86 = arith.subf %82, %85 : vector<8x8xf32>
    %87 = math.exp %86 : vector<8x8xf32>
    %cst_48 = arith.constant dense<0.000000e+00> : vector<8xf32>
    %88 = vector.multi_reduction <add>, %87, %cst_48 [1] : vector<8x8xf32> to vector<8xf32>
    %89 = vector.shape_cast %88 : vector<8xf32> to vector<8x1xf32>
    %90 = tpu.reciprocal %89 {approx = true} : vector<8x1xf32> -> vector<8x1xf32>
    %91 = vector.broadcast %90 : vector<8x1xf32> to vector<8x8xf32>
    %92 = arith.mulf %87, %91 : vector<8x8xf32>
    %93 = arith.truncf %92 : vector<8x8xf32> to vector<8x8xbf16>
    %cst_49 = arith.constant dense<0.000000e+00> : vector<8x16xf32>
    %94 = tpu.matmul %93, %81, %cst_49 {dimension_numbers = #tpu.dot_dimension_numbers<[1], [0], [0], [1], [0, 0, 1, 1], [], []>} : vector<8x8xbf16>, vector<8x16xbf16>, vector<8x16xf32> -> vector<8x16xf32>
    %c0_50 = arith.constant 0 : index
    %c32 = arith.constant 32 : index
    %95 = vector.load %arg20[%c0_50, %c32] : memref<8x64xf32, #tpu.memory_space<vmem>>, vector<8x16xf32>
    tpu.vector_store %arg20[%c0_50, %c32], %94 {strides = array<i32>} : memref<8x64xf32, #tpu.memory_space<vmem>>, vector<8x16xf32>,
    %96 = vector.extract_strided_slice %42 {offsets = [0, 48], sizes = [8, 16], strides = [1, 1]} : vector<8x64xbf16> to vector<8x16xbf16>
    %97 = vector.extract_strided_slice %43 {offsets = [0, 16], sizes = [8, 16], strides = [1, 1]} : vector<8x32xbf16> to vector<8x16xbf16>
    %98 = vector.extract_strided_slice %44 {offsets = [0, 16], sizes = [8, 16], strides = [1, 1]} : vector<8x32xbf16> to vector<8x16xbf16>
    %cst_51 = arith.constant dense<0.000000e+00> : vector<8x8xf32>
    %99 = tpu.matmul %96, %97, %cst_51 {dimension_numbers = #tpu.dot_dimension_numbers<[1], [1], [0], [0], [0, 0, 1, 0], [], []>} : vector<8x16xbf16>, vector<8x16xbf16>, vector<8x8xf32> -> vector<8x8xf32>
    %cst_52 = arith.constant dense<0xFF800000> : vector<8xf32>
    %100 = vector.multi_reduction <maximumf>, %99, %cst_52 [1] : vector<8x8xf32> to vector<8xf32>
    %101 = vector.shape_cast %100 : vector<8xf32> to vector<8x1xf32>
    %102 = vector.broadcast %101 : vector<8x1xf32> to vector<8x8xf32>
    %103 = arith.subf %99, %102 : vector<8x8xf32>
    %104 = math.exp %103 : vector<8x8xf32>
    %cst_53 = arith.constant dense<0.000000e+00> : vector<8xf32>
    %105 = vector.multi_reduction <add>, %104, %cst_53 [1] : vector<8x8xf32> to vector<8xf32>
    %106 = vector.shape_cast %105 : vector<8xf32> to vector<8x1xf32>
    %107 = tpu.reciprocal %106 {approx = true} : vector<8x1xf32> -> vector<8x1xf32>
    %108 = vector.broadcast %107 : vector<8x1xf32> to vector<8x8xf32>
    %109 = arith.mulf %104, %108 : vector<8x8xf32>
    %110 = arith.truncf %109 : vector<8x8xf32> to vector<8x8xbf16>
    %cst_54 = arith.constant dense<0.000000e+00> : vector<8x16xf32>
    %111 = tpu.matmul %110, %98, %cst_54 {dimension_numbers = #tpu.dot_dimension_numbers<[1], [0], [0], [1], [0, 0, 1, 1], [], []>} : vector<8x8xbf16>, vector<8x16xbf16>, vector<8x16xf32> -> vector<8x16xf32>
    %c0_55 = arith.constant 0 : index
    %c48 = arith.constant 48 : index
    %112 = vector.load %arg20[%c0_55, %c48] : memref<8x64xf32, #tpu.memory_space<vmem>>, vector<8x16xf32>
    tpu.vector_store %arg20[%c0_55, %c48], %111 {strides = array<i32>} : memref<8x64xf32, #tpu.memory_space<vmem>>, vector<8x16xf32>,
    %c0_56 = arith.constant 0 : index
    %c0_57 = arith.constant 0 : index
    %113 = vector.load %arg20[%c0_56, %c0_57] : memref<8x64xf32, #tpu.memory_space<vmem>>, vector<8x64xf32>
    %114 = arith.truncf %113 : vector<8x64xf32> to vector<8x64xbf16>
    %c0_58 = arith.constant 0 : index
    %c0_59 = arith.constant 0 : index
    %115 = vector.load %arg7[%c0_58, %c0_59] : memref<64x64xbf16, #tpu.memory_space<vmem>>, vector<64x64xbf16>
    %cst_60 = arith.constant dense<0.000000e+00> : vector<8x64xf32>
    %116 = tpu.matmul %114, %115, %cst_60 {dimension_numbers = #tpu.dot_dimension_numbers<[1], [0], [0], [1], [0, 0, 1, 1], [], []>} : vector<8x64xbf16>, vector<64x64xbf16>, vector<8x64xf32> -> vector<8x64xf32>
    %117 = arith.addf %1, %116 : vector<8x64xf32>
    %c0_61 = arith.constant 0 : index
    %c0_62 = arith.constant 0 : index
    %118 = vector.load %arg12[%c0_61, %c0_62] : memref<1x64xf32, #tpu.memory_space<vmem>>, vector<1x64xf32>
    %119 = arith.mulf %117, %117 : vector<8x64xf32>
    %cst_63 = arith.constant dense<0.000000e+00> : vector<8xf32>
    %120 = vector.multi_reduction <add>, %119, %cst_63 [1] : vector<8x64xf32> to vector<8xf32>
    %121 = vector.shape_cast %120 : vector<8xf32> to vector<8x1xf32>
    %cst_64 = arith.constant 6.400000e+01 : f32
    %122 = vector.broadcast %cst_64 : f32 to vector<8x1xf32>
    %123 = arith.divf %121, %122 : vector<8x1xf32>
    %cst_65 = arith.constant 9.99999974E-6 : f32
    %124 = vector.broadcast %cst_65 : f32 to vector<8x1xf32>
    %125 = arith.addf %123, %124 : vector<8x1xf32>
    %126 = math.rsqrt %125 : vector<8x1xf32>
    %127 = vector.broadcast %126 : vector<8x1xf32> to vector<8x64xf32>
    %128 = arith.mulf %117, %127 : vector<8x64xf32>
    %129 = vector.broadcast %118 : vector<1x64xf32> to vector<8x64xf32>
    %130 = arith.mulf %128, %129 : vector<8x64xf32>
    %131 = arith.truncf %130 : vector<8x64xf32> to vector<8x64xbf16>
    %c0_66 = arith.constant 0 : index
    %c0_67 = arith.constant 0 : index
    %132 = vector.load %arg8[%c0_66, %c0_67] : memref<64x128xbf16, #tpu.memory_space<vmem>>, vector<64x128xbf16>
    %cst_68 = arith.constant dense<0.000000e+00> : vector<8x128xf32>
    %133 = tpu.matmul %131, %132, %cst_68 {dimension_numbers = #tpu.dot_dimension_numbers<[1], [0], [0], [1], [0, 0, 1, 1], [], []>} : vector<8x64xbf16>, vector<64x128xbf16>, vector<8x128xf32> -> vector<8x128xf32>
    %c0_69 = arith.constant 0 : index
    %c0_70 = arith.constant 0 : index
    %134 = vector.load %arg10[%c0_69, %c0_70] : memref<64x128xbf16, #tpu.memory_space<vmem>>, vector<64x128xbf16>
    %cst_71 = arith.constant dense<0.000000e+00> : vector<8x128xf32>
    %135 = tpu.matmul %131, %134, %cst_71 {dimension_numbers = #tpu.dot_dimension_numbers<[1], [0], [0], [1], [0, 0, 1, 1], [], []>} : vector<8x64xbf16>, vector<64x128xbf16>, vector<8x128xf32> -> vector<8x128xf32>
    %136 = arith.negf %133 : vector<8x128xf32>
    %137 = math.exp %136 : vector<8x128xf32>
    %cst_72 = arith.constant 1.000000e+00 : f32
    %138 = vector.broadcast %cst_72 : f32 to vector<8x128xf32>
    %139 = arith.addf %138, %137 : vector<8x128xf32>
    %140 = arith.divf %138, %139 : vector<8x128xf32>
    %141 = arith.mulf %133, %140 : vector<8x128xf32>
    %142 = arith.mulf %141, %135 : vector<8x128xf32>
    %143 = arith.truncf %142 : vector<8x128xf32> to vector<8x128xbf16>
    %c0_73 = arith.constant 0 : index
    %c0_74 = arith.constant 0 : index
    %144 = vector.load %arg9[%c0_73, %c0_74] : memref<128x64xbf16, #tpu.memory_space<vmem>>, vector<128x64xbf16>
    %cst_75 = arith.constant dense<0.000000e+00> : vector<8x64xf32>
    %145 = tpu.matmul %143, %144, %cst_75 {dimension_numbers = #tpu.dot_dimension_numbers<[1], [0], [0], [1], [0, 0, 1, 1], [], []>} : vector<8x128xbf16>, vector<128x64xbf16>, vector<8x64xf32> -> vector<8x64xf32>
    %146 = arith.addf %117, %145 : vector<8x64xf32>
    %c0_76 = arith.constant 0 : index
    %c0_77 = arith.constant 0 : index
    %c0_78 = arith.constant 0 : index
    %147 = vector.load %arg17[%c0_76, %c0_77, %c0_78] : memref<1x8x64xf32, #tpu.memory_space<vmem>>, vector<1x8x64xf32>
    %148 = vector.shape_cast %147 : vector<1x8x64xf32> to vector<8x64xf32>
    %149 = vector.shape_cast %146 : vector<8x64xf32> to vector<1x8x64xf32>
    tpu.vector_store %arg17[%c0_76, %c0_77, %c0_78], %149 {strides = array<i32>} : memref<1x8x64xf32, #tpu.memory_space<vmem>>, vector<1x8x64xf32>,
    return
  }
  func.func @transform_0(%arg0: i32) -> (i32, i32, i32) {
    %c0_i32 = arith.constant 0 : i32
    %c0_i32_0 = arith.constant 0 : i32
    %c0_i32_1 = arith.constant 0 : i32
    return %arg0, %c0_i32, %c0_i32_0 : i32, i32, i32
  }
  func.func @transform_1(%arg0: i32) -> (i32, i32) {
    %c0_i32 = arith.constant 0 : i32
    %c0_i32_0 = arith.constant 0 : i32
    %c0_i32_1 = arith.constant 0 : i32
    return %c0_i32, %c0_i32_0 : i32, i32
  }
  func.func @transform_2(%arg0: i32) -> (i32, i32) {
    %c0_i32 = arith.constant 0 : i32
    %c0_i32_0 = arith.constant 0 : i32
    %c0_i32_1 = arith.constant 0 : i32
    return %c0_i32, %c0_i32_0 : i32, i32
  }
  func.func @transform_3(%arg0: i32) -> (i32, i32) {
    %c0_i32 = arith.constant 0 : i32
    %c0_i32_0 = arith.constant 0 : i32
    %c0_i32_1 = arith.constant 0 : i32
    return %c0_i32, %c0_i32_0 : i32, i32
  }
  func.func @transform_4(%arg0: i32) -> (i32, i32) {
    %c0_i32 = arith.constant 0 : i32
    %c0_i32_0 = arith.constant 0 : i32
    %c0_i32_1 = arith.constant 0 : i32
    return %c0_i32, %c0_i32_0 : i32, i32
  }
  func.func @transform_5(%arg0: i32) -> (i32, i32) {
    %c0_i32 = arith.constant 0 : i32
    %c0_i32_0 = arith.constant 0 : i32
    %c0_i32_1 = arith.constant 0 : i32
    return %c0_i32, %c0_i32_0 : i32, i32
  }
  func.func @transform_6(%arg0: i32) -> (i32, i32) {
    %c0_i32 = arith.constant 0 : i32
    %c0_i32_0 = arith.constant 0 : i32
    %c0_i32_1 = arith.constant 0 : i32
    return %c0_i32, %c0_i32_0 : i32, i32
  }
  func.func @transform_7(%arg0: i32) -> (i32, i32) {
    %c0_i32 = arith.constant 0 : i32
    %c0_i32_0 = arith.constant 0 : i32
    %c0_i32_1 = arith.constant 0 : i32
    return %c0_i32, %c0_i32_0 : i32, i32
  }
  func.func @transform_8(%arg0: i32) -> (i32, i32) {
    %c0_i32 = arith.constant 0 : i32
    %c0_i32_0 = arith.constant 0 : i32
    %c0_i32_1 = arith.constant 0 : i32
    return %c0_i32, %c0_i32_0 : i32, i32
  }
  func.func @transform_9(%arg0: i32) -> (i32, i32) {
    %c0_i32 = arith.constant 0 : i32
    %c0_i32_0 = arith.constant 0 : i32
    %c0_i32_1 = arith.constant 0 : i32
    return %c0_i32, %c0_i32_0 : i32, i32
  }
  func.func @transform_10(%arg0: i32) -> (i32, i32) {
    %c0_i32 = arith.constant 0 : i32
    %c0_i32_0 = arith.constant 0 : i32
    %c0_i32_1 = arith.constant 0 : i32
    return %c0_i32, %c0_i32_0 : i32, i32
  }
  func.func @transform_11(%arg0: i32) -> (i32, i32) {
    %c0_i32 = arith.constant 0 : i32
    %c0_i32_0 = arith.constant 0 : i32
    %c0_i32_1 = arith.constant 0 : i32
    return %c0_i32, %c0_i32_0 : i32, i32
  }
  func.func @transform_12(%arg0: i32) -> (i32, i32) {
    %c0_i32 = arith.constant 0 : i32
    %c0_i32_0 = arith.constant 0 : i32
    %c0_i32_1 = arith.constant 0 : i32
    return %c0_i32, %c0_i32_0 : i32, i32
  }
  func.func @transform_13(%arg0: i32) -> (i32, i32) {
    %c0_i32 = arith.constant 0 : i32
    %c0_i32_0 = arith.constant 0 : i32
    %c0_i32_1 = arith.constant 0 : i32
    return %c0_i32, %c0_i32_0 : i32, i32
  }
  func.func @transform_14(%arg0: i32) -> (i32, i32) {
    %c0_i32 = arith.constant 0 : i32
    %c0_i32_0 = arith.constant 0 : i32
    %c0_i32_1 = arith.constant 0 : i32
    return %c0_i32, %c0_i32_0 : i32, i32
  }
  func.func @transform_15(%arg0: i32) -> (i32, i32) {
    %c0_i32 = arith.constant 0 : i32
    %c0_i32_0 = arith.constant 0 : i32
    %c0_i32_1 = arith.constant 0 : i32
    return %c0_i32, %c0_i32_0 : i32, i32
  }
  func.func @transform_16(%arg0: i32) -> (i32, i32, i32) {
    %c0_i32 = arith.constant 0 : i32
    %c0_i32_0 = arith.constant 0 : i32
    %c0_i32_1 = arith.constant 0 : i32
    return %arg0, %c0_i32, %c0_i32_0 : i32, i32, i32
  }
  func.func @transform_17(%arg0: i32) -> (i32, i32, i32) {
    %c0_i32 = arith.constant 0 : i32
    %c0_i32_0 = arith.constant 0 : i32
    %c0_i32_1 = arith.constant 0 : i32
    return %arg0, %c0_i32, %c0_i32_0 : i32, i32, i32
  }
  func.func @transform_18(%arg0: i32) -> (i32, i32, i32) {
    %c0_i32 = arith.constant 0 : i32
    %c0_i32_0 = arith.constant 0 : i32
    %c0_i32_1 = arith.constant 0 : i32
    return %arg0, %c0_i32, %c0_i32_0 : i32, i32, i32
  }
}

</mosaic_0001>

<bundles_post_ra>
// kernel: tpu_custom_call.1
= control target key start
LH: loop header
LB: loop body
LE: loop exit
PB: predicated region body
PF: predicated region fallthrough
CT: control target
= control target key end

     0   :  { %s2807_s0 = inlined_call_operand.vmem [shape: f32[2,8,64], index: 0, kind: input, shape index: {}]   ;;  %s2808_s1 = inlined_call_operand.vmem [shape: bf16[64,64], index: 1, kind: input, shape index: {}]   ;;  %s2809_s2 = inlined_call_operand.vmem [shape: bf16[64,64], index: 2, kind: input, shape index: {}]   ;;  %s2810_s3 = inlined_call_operand.vmem [shape: bf16[64,32], index: 3, kind: input, shape index: {}]   ;;  %s2811_s4 = inlined_call_operand.vmem [shape: bf16[64,32], index: 4, kind: input, shape index: {}]   ;;  %s2812_s5 = inlined_call_operand.vmem [shape: bf16[64,32], index: 5, kind: input, shape index: {}]   ;;  %s2813_s6 = inlined_call_operand.vmem [shape: bf16[64,64], index: 6, kind: input, shape index: {}]   ;;  %s2814_s7 = inlined_call_operand.vmem [shape: bf16[64,128], index: 7, kind: input, shape index: {}]   ;;  %s2815_s8 = inlined_call_operand.vmem [shape: bf16[128,64], index: 8, kind: input, shape index: {}]   ;;  %s2816_s9 = inlined_call_operand.vmem [shape: bf16[64,128], index: 9, kind: input, shape index: {}]   ;;  %s2817_s10 = inlined_call_operand.hbm [shape: f32[1,64], index: 10, kind: input, shape index: {}]   ;;  %s2818_s11 = inlined_call_operand.hbm [shape: f32[1,64], index: 11, kind: input, shape index: {}]   ;;  %s2819_s12 = inlined_call_operand.vmem [shape: f32[8,64], index: 12, kind: input, shape index: {}]   ;;  %s2820_s13 = inlined_call_operand.hbm [shape: f32[8,64], index: 13, kind: input, shape index: {}]   ;;  %s2821_s14 = inlined_call_operand.hbm [shape: f32[8,32], index: 14, kind: input, shape index: {}]   ;;  %s2822_s15 = inlined_call_operand.hbm [shape: f32[8,32], index: 15, kind: input, shape index: {}]   ;;  %s2823_s16 = inlined_call_operand.hbm [shape: f32[2,8,64], index: 16, kind: output, shape index: {0}]   ;;  %s2824_s17 = inlined_call_operand.hbm [shape: f32[2,8,32], index: 17, kind: output, shape index: {1}]   ;;  %s2825_s18 = inlined_call_operand.hbm [shape: f32[2,8,32], index: 18, kind: output, shape index: {2}]  }
   0x1   :  { %2839 = sst [smem:[#allocation27_spill]] %s2807_s0 }
   0x2   :  { %2840 = sst [smem:[#allocation28_spill]] %s2808_s1 }
   0x3   :  { %2841 = sst [smem:[#allocation29_spill]] %s2809_s2 }
   0x4   :  { %2842 = sst [smem:[#allocation30_spill]] %s2810_s3 }
   0x5   :  { %2843 = sst [smem:[#allocation31_spill]] %s2817_s10 }
   0x6   :  { %2844 = sst [smem:[#allocation32_spill]] %s2818_s11 }
   0x7   :  { %2845 = sst [smem:[#allocation33_spill]] %s2821_s14 }
   0x8   :  { %2846 = sst [smem:[#allocation34_spill]] %s2823_s16 }
   0x9   :  { %24 = vsyncpa [#allocation4], 0 }
   0xa   :  { %25 = vsyncpa [#allocation7], 0 }
   0xb   :  { %26 = vsyncpa [#allocation10], 0 }
   0xc   :  { %27 = vsyncpa [#allocation5], 0 }
   0xd   :  { %29 = vsyncpa [#allocation5 + $0x1], 0 }
   0xe   :  { %30 = vsyncpa [#allocation14], 0 }
   0xf   :  { %32 = vsyncpa [#allocation14 + $0x1], 0  ;;  %s2433_s27 = smov 0   ;;  %s2435_s28 = smov 0  }
  0x10   :  { %s2437_s29 = smov 0   ;;  %s2439_s30 = smov 0  }
  0x11 LB: > { %2847 = sst [smem:[#allocation21_spill]] %s2312_s27  ;;  %s2454_s0 = sadd.s32 4294967295, %s2324_s30   ;;  %s2324_s30 = sphi %s2439_s30, %s2873_s30   ;;  %s2320_s29 = sphi %s2437_s29, %s2875_s29   ;;  %s2316_s28 = sphi %s2435_s28, %s2877_s28   ;;  %s2312_s27 = sphi %s2433_s27, %s2876_s27  }
  0x12   : > { %2848 = sst [smem:[#allocation22_spill]] %s2320_s29  ;;  %s2828_s19 = sadd.s32 4294967294, %s2324_s30  }
  0x13   : > { %2849 = sst [smem:[#allocation23_spill]] %s2324_s30  ;;  %s2458_s1 = sadd.s32 1, %s2324_s30  }
  0x14   : > { %2850 = sst [smem:[#allocation24_spill]] %s2458_s1  ;;  %s386_s20 = sadd.s32 1, %s2320_s29 }
  0x15   : > { %s383_s21 = ssub.s32 %s2324_s30, %s2458_s1  ;;  %p396_p0 = scmp.ne.s32.totalorder %s2320_s29, %s2316_s28 }
  0x16   : > { %p384_p1 = scmp.eq.s32.totalorder %s383_s21, 0  ;;  %p397_p2 = scmp.eq.s32.totalorder %s2454_s0, 1 }
  0x17   : > { %p402_p3 = scmp.ne.s32.totalorder %s2316_s28, %s2312_s27  ;;  %p403_p4 = scmp.eq.s32.totalorder %s2828_s19, 1 }
  0x18   : > { %s2471_s22 = scalar_select %p384_p1, %s2320_s29, %s386_s20  }
  0x19   : > { %p2473_p5 = por %p397_p2, %p396_p0  ;;  %p2477_p6 = por %p403_p4, %p402_p3 }
  0x1a   : > { %2851 = sst [smem:[#allocation25_spill]] %s2471_s22  ;;  %p1663_p7 = scmp.ge.s32.totalorder %s2324_s30, 1 }
  0x1b   : > { %s2853_s23 = scalar_select %p2477_p6, 1, 0 }
  0x1c   : > { %p462_p8 = scmp.lt.s32.totalorder %s2324_s30, 3  ;;  %p1957_p9 = scmp.eq.s32.totalorder %s2454_s0, 0 }
  0x1d   : > { %2854 = sst [smem:[#allocation26_spill]] %s2853_s23  ;;  %s2326_s21 = smov [#allocation6]  }
  0x1e   : > { %p2484_p10 = pnand %p1663_p7, %p462_p8  ;;  %s2856_s11 = sld [smem:[#allocation32_spill]] }
  0x1f   : > { %s515_s19 = sshll.u32 %s2326_s21, 4  ;;  %s2857_s14 = sld [smem:[#allocation33_spill]]  ;;  %s516_s19 = int_to_ptr.vmem [resolvable:$true] %s515_s19 }
  0x20   : > { %p1931_p11 = pneg %p2484_p10  ;;  %s2859_s10 = sld [smem:[#allocation31_spill]] }
  0x21   : > { %s2327_s27 = smov [#allocation9]   ;;  %s2328_s30 = smov [#allocation3]  }
  0x22   : > { %p2498_p12 = pnand %p1957_p9, %p1931_p11  ;;  %s542_s21 = sshll.u32 %s2327_s27, 4  ;;  %s543_s21 = int_to_ptr.vmem [resolvable:$true] %s542_s21 }
  0x23   : > { %s503_s16 = sshll.u32 %s2328_s30, 4  ;;  %s2329_s25 = smov [#allocation8]   ;;  %s504_s16 = int_to_ptr.vmem [resolvable:$true] %s503_s16 }
  0x24   : > { %s513_s20 = sshll.u32 %s2856_s11, 4  ;;  %s530_s26 = sshll.u32 %s2329_s25, 4  ;;  %s514_s20 = int_to_ptr.hbm [resolvable:$true] %s513_s20  ;;  %s531_s26 = int_to_ptr.vmem [resolvable:$true] %s530_s26 }
  0x25   : > { %s540_s1 = sshll.u32 %s2857_s14, 4  ;;  %s528_s14 = sshll.u32 %s2820_s13, 4  ;;  %s541_s1 = int_to_ptr.hbm [resolvable:$true] %s540_s1  ;;  %s529_s14 = int_to_ptr.hbm [resolvable:$true] %s528_s14 }
  0x26   : > { %s501_s11 = sshll.u32 %s2859_s10, 4  ;;  %s502_s11 = int_to_ptr.hbm [resolvable:$true] %s501_s11 }
  0x27   : > { %1937 = dma.hbm_to_vmem [thread:$0]  (!%p2498_p12), %s514_s20, 16, %s516_s19, [#allocation7]  }
  0x28   : > { %1943 = dma.hbm_to_vmem [thread:$0]  (!%p2498_p12), %s541_s1, 128, %s543_s21, [#allocation10]  }
  0x29   : > { %1934 = dma.hbm_to_vmem [thread:$0]  (!%p2498_p12), %s502_s11, 16, %s504_s16, [#allocation4]  }
  0x2a   : > { %s552_s19 = sshll.u32 %s2822_s15, 4  ;;  %s2330_s1 = smov [#allocation11]   ;;  %s553_s19 = int_to_ptr.hbm [resolvable:$true] %s552_s19 }
  0x2b   : > { %1940 = dma.hbm_to_vmem [thread:$0]  (!%p2498_p12), %s529_s14, 128, %s531_s26, [#allocation7]  }
  0x2c   : > { %s554_s20 = sshll.u32 %s2330_s1, 4  ;;  %574 = sbr.rel (%p2484_p10) target bundleno = 1707 (0x6ab), region = 84  ;;  %s555_s20 = int_to_ptr.vmem [resolvable:$true] %s554_s20 }
  0x2d   : > { %1946 = dma.hbm_to_vmem [thread:$0]  (!%p2498_p12), %s553_s19, 128, %s555_s20, [#allocation10]  }
  0x31   : > { %2291 = dma.done.wait (%p1957_p9), [#allocation4], 16  }
  0x32   : > { %2293 = vsyncadd (%p1957_p9), [#allocation4], 4294967280 }
  0x33   : > { %2295 = dma.done.wait (%p1957_p9), [#allocation7], 144  }
  0x34   : > { %2297 = vsyncadd (%p1957_p9), [#allocation7], 4294967152 }
  0x35   : > { %2299 = dma.done.wait (%p1957_p9), [#allocation10], 256  }
  0x36   : > { %2301 = vsyncadd (%p1957_p9), [#allocation10], 4294967040  ;;  %p658_p13 = scmp.lt.s32.totalorder %s2454_s0, 1  ;;  %s2860_s30 = sld [smem:[#allocation27_spill]]  ;;  %vm666_vm0 = vcmask 523264   ;;  %v2331_v3 = vmov 64.0  }
  0x37   : > { %2014 = vrcp.f32 %v2331_v3  ;;  %s2861_s29 = sld [smem:[#allocation28_spill]]  ;;  %v1880_v7 = vld [vmem:[%s2811_s4 + $0x18] sm:$0xff]  ;;  %v1879_v12 = vld [vmem:[%s2811_s4 + $0x10] sm:$0xff]  ;;  %v1878_v17 = vld [vmem:[%s2811_s4 + $0x8] sm:$0xff]  ;;  %vm933_vm5 = vcmask 261120   ;;  %vm975_vm6 = vcmask 1043456  }
  0x38   : > { %s659_s10 = scalar_select %p658_p13, %s2454_s0, 1  ;;  %v1884_v8 = vld [vmem:[%s2812_s5 + $0x18] sm:$0xff]  ;;  %869 = vmatpush.bf16.msra.mxu3 %v1880_v7  ;;  %v1883_v13 = vld [vmem:[%s2812_s5 + $0x10] sm:$0xff]  ;;  %v1882_v18 = vld [vmem:[%s2812_s5 + $0x8] sm:$0xff]  ;;  %vm939_vm7 = vcmask 130048   ;;  %vm959_vm8 = vcmask 64512  }
  0x39   : > { %s2863_s3 = sld [smem:[#allocation30_spill]]  ;;  %914 = vmatpush.bf16.msra.mxu0 %v1884_v8  ;;  %v1877_v22 = vld [vmem:[%s2811_s4] sm:$0xff]  ;;  %v2012_v39 = vld [vmem:[#allocation3] ss:$0 sm:$0xff]  ;;  %v928_v48 = vld [vmem:[#allocation9] sm:$0xff]  ;;  %s2332_s26 = smov 112  }
  0x3a   : > { %s1679_s11 = sshll.u32 %s659_s10, 3  ;;  %v1881_v23 = vld [vmem:[%s2812_s5] sm:$0xff]  ;;  %s2864_s27 = sld [smem:[#allocation29_spill]]  ;;  %v925_v61 = vld [vmem:[#allocation8] sm:$0xff]  ;;  %vm1046_vm9 = vcmask 261248   ;;  %vm1114_vm10 = vcmask 392448  }
  0x3b   : > { %v930_v49 = vld [vmem:[#allocation11] sm:$0xff]  ;;  %s2334_s1 = smov 96   ;;  %s2335_s20 = smov 32   ;;  %vm1166_vm11 = vcmask 523648  }
  0x3c   : > { %s661_s23 = scalar_lea.vmem %s2860_s30, %s1679_s11  ;;  %870 = vmatpush.bf16.msra.mxu3 %v1879_v12  ;;  %s2837_s30 = sand.u32 1, %s2316_s28   ;;  %v923_v58 = vld [vmem:[%s2819_s12] sm:$0xff] }
  0x3d   : > { %v2540_v0 = vld [vmem:[%s661_s23] sm:$0xff]  ;;  %v2015_v4 = vpop.eup %2014  ;;  %s2862_s22 = smov %s2861_s29  ;;  %v1868_v5 = vld [vmem:[%s2861_s29 + $0x18] sm:$0xff]  ;;  %915 = vmatpush.bf16.msra.mxu0 %v1883_v13  ;;  %s2617_s23 = sshll.u32 %s2837_s30, 3 }
  0x3e   : > { %v665_v1 = vmul.f32 %v2540_v0, %v2540_v0  ;;  %v671_v9 = vmul.f32 64.0, %v2015_v4  ;;  %734 = vmatpush.bf16.msra.mxu1 %v1868_v5  ;;  %v1867_v10 = vld [vmem:[%s2862_s22 + $0x10] sm:$0xff]  ;;  %v1866_v15 = vld [vmem:[%s2862_s22 + $0x8] sm:$0xff]  ;;  %v1865_v20 = vld [vmem:[%s2862_s22] sm:$0xff]  ;;  %vm675_vm1 = vweird.f32 %v2015_v4  ;;  %s2838_s24 = scalar_lea.vmem [#allocation15], %s2617_s23  ;;  %s650_s21 = scalar_lea.vmem [#allocation13], %s2617_s23 }
  0x3f   : > { %v1876_v6 = vld [vmem:[%s2863_s3 + $0x18] sm:$0xff]  ;;  %v1875_v11 = vld [vmem:[%s2863_s3 + $0x10] sm:$0xff]  ;;  %v1874_v16 = vld [vmem:[%s2863_s3 + $0x8] sm:$0xff]  ;;  %s2336_s10 = smov 16   ;;  %s2337_s11 = smov 48  }
  0x40   : > { %v667_v2 = vsel %vm666_vm0, %v665_v1, 0.0  ;;  %824 = vmatpush.bf16.msra.mxu2 %v1876_v6  ;;  %v672_v14 = vsub.f32 1.0, %v671_v9  ;;  %871 = vmatpush.bf16.msra.mxu3 %v1878_v17  ;;  %v1873_v21 = vld [vmem:[%s2863_s3] sm:$0xff]  ;;  %s2865_s19 = smov %s2864_s27  ;;  %v1872_v25 = vld [vmem:[%s2864_s27 + $0x18] sm:$0xff]  ;;  %s2333_s27 = smov 80  }
  0x41   : > { %668 = vadd.xlane.f32.xlu0 %v667_v2  ;;  %916 = vmatpush.bf16.msra.mxu0 %v1882_v18  ;;  %v1871_v27 = vld [vmem:[%s2865_s19 + $0x10] sm:$0xff]  ;;  %v1870_v30 = vld [vmem:[%s2865_s19 + $0x8] sm:$0xff]  ;;  %v1869_v32 = vld [vmem:[%s2865_s19] sm:$0xff]  ;;  %s1441_s14 = sand.u32 1, %s2454_s0   ;;  %s2731_s16 = sshll.u32 %s2454_s0, 3 }
  0x42   : > { %735 = vmatpush.bf16.msra.mxu1 %v1867_v10  ;;  %v673_v19 = vmul.f32 %v2015_v4, %v672_v14  ;;  %s2210_s29 = scalar_lea.hbm %s2824_s17, 16 }
  0x44   : > { %825 = vmatpush.bf16.msra.mxu2 %v1875_v11  ;;  %v674_v24 = vadd.f32 %v2015_v4, %v673_v19  ;;  %872 = vmatpush.bf16.msra.mxu3 %v1877_v22 }
  0x45   : > { %917 = vmatpush.bf16.msra.mxu0 %v1881_v23 }
  0x46   : > { %736 = vmatpush.bf16.msra.mxu1 %v1866_v15  ;;  %v2596_v26 = vsel %vm675_vm1, %v2015_v4, %v674_v24 }
  0x48   : > { %826 = vmatpush.bf16.msra.mxu2 %v1874_v16 }
  0x4a   : > { %737 = vmatpush.bf16.msra.mxu1 %v1865_v20 }
  0x4c   : > { %827 = vmatpush.bf16.msra.mxu2 %v1873_v21 }
  0x4e   : > { %779 = vmatpush.bf16.msrb.mxu1 %v1872_v25 }
  0x52   : > { %780 = vmatpush.bf16.msrb.mxu1 %v1871_v27 }
  0x56   : > { %781 = vmatpush.bf16.msrb.mxu1 %v1870_v30 }
  0x5a   : > { %782 = vmatpush.bf16.msrb.mxu1 %v1869_v32 }
  0xb4   : > { %v669_v28 = vpop.xlane.xlu0 %668 }
  0xb5   : > { %v677_v29 = vmul.f32 %v2596_v26, %v669_v28 }
  0xb7   : > { %v678_v31 = vadd.f32 1e-05, %v677_v29 }
  0xb9   : > { %2016 = vrsqrt.f32 %v678_v31  ;;  %vm685_vm3 = vweird.f32 %v678_v31 }
  0xbf   : > { %v2017_v33 = vpop.eup %2016 }
  0xc0   : > { %v680_v34 = vmul.f32 %v2017_v33, %v678_v31  ;;  %vm686_vm2 = vweird.f32 %v2017_v33 }
  0xc1   : > { %vm687_vm4 = vmor %vm685_vm3, %vm686_vm2 }
  0xc2   : > { %v681_v35 = vmul.f32 %v2017_v33, %v680_v34 }
  0xc4   : > { %v682_v36 = vmul.f32 0.5, %v681_v35 }
  0xc6   : > { %v683_v37 = vsub.f32 1.5, %v682_v36 }
  0xc8   : > { %v684_v38 = vmul.f32 %v2017_v33, %v683_v37 }
  0xca   : > { %v688_v40 = vsel %vm687_vm4, %v2017_v33, %v684_v38 }
  0xcb   : > { %v689_v41 = vmul.f32 %v688_v40, %v2540_v0 }
  0xcd   : > { %v693_v42 = vmul.f32 %v2012_v39, %v689_v41 }
  0xcf   : > { %v694_v43 = vpack.c.bf16 %v693_v42, %v693_v42 }
  0xd1   : > { %1696 = vmatmul.msk.bf16.vlgmr.msra.gmra.mxu1 %vm666_vm0, %v694_v43  ;;  %1730 = vmatmul.msk.bf16.vlgmr.msra.gmra.mxu2 %vm666_vm0, %v694_v43 }
  0xd2   : > { %1747 = vmatmul.msk.bf16.vlgmr.msra.gmra.mxu3 %vm666_vm0, %v694_v43  ;;  %1764 = vmatmul.msk.bf16.vlgmr.msra.gmra.mxu0 %vm666_vm0, %v694_v43 }
  0xe1   : > { %1713 = vmatmul.msk.bf16.vlgmr.msrb.gmra.mxu1 %vm666_vm0, %v694_v43 }
 0x14e   : > { %v739_v44 = vpop.f32.mrf.mxu1 }
 0x14f   : > { %v919_v45 = vpop.f32.mrf.mxu0  ;;  %v924_v3 = vmul.f32 %v923_v58, %v739_v44 }
 0x150   : > { %935 = vst.msk [vmem:[%s2838_s24] sm:$0xff] %vm933_vm5, %v919_v45  ;;  %v2623_v46 = vpack.c.bf16 %v919_v45, %v919_v45 }
 0x152   : > { %v977_v47 = vsel %vm975_vm6, %v2623_v46, 0  ;;  %v1087_v27 = vunpack.c.l.b16 %v2623_v46 }
 0x153   : > { %986 = vmatpush.bf16.msrb.mxu2 %v977_v47  ;;  %1036 = vmatpush.bf16.msrb.mxu0 %v977_v47 }
 0x154   : > { %v829_v50 = vpop.f32.mrf.mxu2  ;;  %v1088_v29 = vpack.c.b16 %v1087_v27, %v1087_v27 }
 0x155   : > { %v929_v51 = vmul.f32 %v928_v48, %v829_v50  ;;  %v874_v52 = vpop.f32.mrf.mxu3 }
 0x156   : > { %v931_v53 = vmul.f32 %v930_v49, %v874_v52  ;;  %v741_v54 = vpop.f32.mrf.mxu1 }
 0x157   : > { %v921_v55 = vpop.f32.mrf.mxu0 }
 0x158   : > { %v932_v56 = vadd.f32 %v931_v53, %v929_v51 }
 0x15a   : > { %v937_v57 = vpack.c.bf16 %v932_v56, %v932_v56  ;;  %934 = vst.msk [vmem:[%s650_s21] sm:$0xff] %vm933_vm5, %v932_v56 }
 0x15c   : > { %v831_v59 = vpop.f32.mrf.mxu2  ;;  %v944_v60 = vsel %vm939_vm7, %v937_v57, 0  ;;  %v1051_v62 = vunpack.c.l.b16 %v937_v57 }
 0x15d   : > { %v876_v63 = vpop.f32.mrf.mxu3  ;;  %953 = vmatpush.bf16.xpose.msra.mxu1 %v944_v60  ;;  %1008 = vmatpush.bf16.xpose.msrb.mxu3 %v944_v60 }
 0x15e   : > { %v784_v1 = vpop.f32.mrf.mxu1  ;;  %v1052_v2 = vpack.c.b16 %v1051_v62, %v1051_v62 }
 0x15f   : > { %v926_v4 = vmul.f32 %v925_v61, %v784_v1 }
 0x160   : > { %1053 = vrot.lane.b32.xlu1 %v1052_v2, %s2332_s26 }
 0x161   : > { %v927_v5 = vadd.f32 %v926_v4, %v924_v3 }
 0x163   : > { %v936_v6 = vpack.c.bf16 %v927_v5, %v927_v5 }
 0x165   : > { %1765 = vmatmul.msk.bf16.vlgmr.msra.gmra.mxu1 %vm939_vm7, %v936_v6  ;;  %v994_v7 = vunpack.c.l.b16 %v936_v6 }
 0x166   : > { %v786_v8 = vpop.f32.mrf.mxu1 }
 0x167   : > { %v995_v9 = vpack.c.b16 %v994_v7, %v994_v7 }
 0x169   : > { %1116 = vrot.lane.b32.xlu2 %v995_v9, %s2333_s27  ;;  %1048 = vrot.lane.b32.xlu1 %v995_v9, %s2334_s1  ;;  %s1473_s27 = sshll.u32 %s650_s21, 4  ;;  %s1474_s27 = int_to_ptr.vmem [resolvable:$true] %s1473_s27 }
 0x16a   : > { %996 = vrot.lane.b32.xlu0 %v995_v9, %s2332_s26 }
 0x1c3   : > { %v1117_v17 = vpop.permute.xlu2 %1116 }
 0x1d2   : > { %v1054_v10 = vpop.permute.xlu1 %1053 }
 0x1d3   : > { %v1059_v11 = vsel %vm939_vm7, %v1054_v10, 0 }
 0x1d4   : > { %1068 = vmatpush.bf16.xpose.msrb.mxu1 %v1059_v11  ;;  %1128 = vmatpush.bf16.xpose.msra.mxu3 %v1059_v11 }
 0x1db   : > { %v1049_v12 = vpop.permute.xlu1 %1048 }
 0x1dc   : > { %v997_v13 = vpop.permute.xlu0 %996  ;;  %1769 = vmatmul.msk.bf16.vlgmr.msrb.gmra.mxu1 %vm939_vm7, %v1049_v12 }
 0x1dd   : > { %1767 = vmatmul.msk.bf16.vlgmr.msrb.gmra.mxu3 %vm939_vm7, %v997_v13  ;;  %v1888_v13 = vld [vmem:[%s2813_s6 + $0x18] sm:$0xff] }
 0x1de   : > { %1209 = vmatpush.bf16.msra.mxu1 %v1888_v13 }
 0x1e2   : > { %v955_v14 = vpop.f32.mrf.mxu1 }
 0x1e3   : > { %v960_v15 = vsel %vm959_vm8, %v955_v14, -inf }
 0x1e4   : > { %961 = vmax.xlane.f32.xlu2 %v960_v15 }
 0x1ea   : > { %v957_v16 = vpop.f32.mrf.mxu1 }
 0x1eb   : > { %v1886_v16 = vld [vmem:[%s2813_s6 + $0x8] sm:$0xff] }
 0x1ed   : > { %1771 = vmatmul.msk.bf16.vlgmr.msra.gmra.mxu3 %vm939_vm7, %v1117_v17  ;;  %v1885_v17 = vld [vmem:[%s2813_s6] sm:$0xff] }
 0x257   : > { %v962_v23 = vpop.xlane.xlu2 %961 }
 0x258   : > { %v963_v24 = vsub.f32 %v955_v14, %v962_v23  ;;  %v1887_v14 = vld [vmem:[%s2813_s6 + $0x10] sm:$0xff] }
 0x259   : > { %v1070_v18 = vpop.f32.mrf.mxu1  ;;  %1210 = vmatpush.bf16.msra.mxu1 %v1887_v14 }
 0x25a   : > { %v1074_v19 = vsel %vm959_vm8, %v1070_v18, -inf  ;;  %v964_v28 = vmul.f32 1.442695, %v963_v24 }
 0x25b   : > { %1075 = vmax.xlane.f32.xlu0 %v1074_v19 }
 0x25c   : > { %2018 = vpow2.f32 %v964_v28  ;;  %v1892_v28 = vld [vmem:[%s2814_s7 + $0x18] sm:$0xff] }
 0x25d   : > { %1211 = vmatpush.bf16.msra.mxu1 %v1886_v16 }
 0x260   : > { %v1010_v20 = vpop.f32.mrf.mxu3 }
 0x261   : > { %v1014_v21 = vsel %vm959_vm8, %v1010_v20, -inf  ;;  %v1072_v22 = vpop.f32.mrf.mxu1  ;;  %1212 = vmatpush.bf16.msra.mxu1 %v1885_v17 }
 0x262   : > { %1015 = vmax.xlane.f32.xlu1 %v1014_v21  ;;  %v2019_v32 = vpop.eup %2018 }
 0x263   : > { %v966_v34 = vsel %vm959_vm8, %v2019_v32, 0.0 }
 0x268   : > { %v1012_v25 = vpop.f32.mrf.mxu3 }
 0x26f   : > { %1089 = vrot.lane.b32.xlu0 %v1088_v29, %s2332_s26  ;;  %v1896_v29 = vld [vmem:[%s2816_s9 + $0x18] sm:$0xff]  ;;  %s1471_s26 = scalar_lea.hbm %s2824_s17, %s2731_s16 }
 0x270   : > { %v1130_v30 = vpop.f32.mrf.mxu3  ;;  %1326 = vmatpush.bf16.msrb.mxu3 %v1896_v29  ;;  %s1475_s1 = sshll.u32 %s1471_s26, 4  ;;  %s1476_s1 = int_to_ptr.hbm [resolvable:$true] %s1475_s1 }
 0x271   : > { %v1134_v31 = vsel %vm959_vm8, %v1130_v30, -inf }
 0x272   : > { %1135 = vmax.xlane.f32.xlu2 %v1134_v31  ;;  %v1890_v31 = vld [vmem:[%s2814_s7 + $0x8] sm:$0xff] }
 0x278   : > { %v1132_v33 = vpop.f32.mrf.mxu3 }
 0x279   : > { %v1889_v33 = vld [vmem:[%s2814_s7] sm:$0xff] }
 0x27a   : > { %967 = vadd.xlane.f32.xlu2 %v966_v34  ;;  %v1893_v34 = vld [vmem:[%s2816_s9] sm:$0xff] }
 0x2ce   : > { %v1076_v35 = vpop.xlane.xlu0 %1075 }
 0x2cf   : > { %v1077_v36 = vsub.f32 %v1070_v18, %v1076_v35 }
 0x2d1   : > { %v1078_v37 = vmul.f32 1.442695, %v1077_v36 }
 0x2d3   : > { %2020 = vpow2.f32 %v1078_v37 }
 0x2d5   : > { %v1016_v38 = vpop.xlane.xlu1 %1015 }
 0x2d6   : > { %v1017_v39 = vsub.f32 %v1010_v20, %v1016_v38 }
 0x2d8   : > { %v1018_v40 = vmul.f32 1.442695, %v1017_v39 }
 0x2d9   : > { %v2021_v41 = vpop.eup %2020 }
 0x2da   : > { %2022 = vpow2.f32 %v1018_v40  ;;  %v1080_v42 = vsel %vm959_vm8, %v2021_v41, 0.0 }
 0x2db   : > { %1081 = vadd.xlane.f32.xlu2 %v1080_v42 }
 0x2e0   : > { %v2023_v43 = vpop.eup %2022 }
 0x2e1   : > { %v1020_v44 = vsel %vm959_vm8, %v2023_v43, 0.0  ;;  %v1090_v45 = vpop.permute.xlu0 %1089 }
 0x2e2   : > { %1021 = vadd.xlane.f32.xlu1 %v1020_v44  ;;  %v1095_v46 = vsel %vm975_vm6, %v1090_v45, 0  ;;  %v2013_v44 = vld [vmem:[#allocation6] ss:$0 sm:$0xff] }
 0x2e3   : > { %1104 = vmatpush.bf16.msra.mxu2 %v1095_v46  ;;  %1156 = vmatpush.bf16.msra.mxu0 %v1095_v46 }
 0x2e5   : > { %v1136_v47 = vpop.xlane.xlu2 %1135 }
 0x2e6   : > { %v1137_v48 = vsub.f32 %v1130_v30, %v1136_v47  ;;  %v1895_v30 = vld [vmem:[%s2816_s9 + $0x10] sm:$0xff] }
 0x2e7   : > { %1327 = vmatpush.bf16.msrb.mxu3 %v1895_v30 }
 0x2e8   : > { %v1138_v49 = vmul.f32 1.442695, %v1137_v48 }
 0x2ea   : > { %2024 = vpow2.f32 %v1138_v49  ;;  %v1903_v49 = vld [vmem:[%s2815_s8 + $0x30] sm:$0xff] }
 0x2ed   : > { %v968_v50 = vpop.xlane.xlu2 %967 }
 0x2ee   : > { %2026 = vrcp.f32 %v968_v50  ;;  %v1902_v50 = vld [vmem:[%s2815_s8 + $0x28] sm:$0xff] }
 0x2f0   : > { %v2025_v51 = vpop.eup %2024 }
 0x2f1   : > { %v1140_v52 = vsel %vm959_vm8, %v2025_v51, 0.0 }
 0x2f2   : > { %1141 = vadd.xlane.f32.xlu1 %v1140_v52  ;;  %v1900_v52 = vld [vmem:[%s2815_s8 + $0x18] sm:$0xff] }
 0x2f4   : > { %v2027_v53 = vpop.eup %2026 }
 0x2f5   : > { %v970_v54 = vmul.f32 %v2027_v53, %v2019_v32  ;;  %v1894_v32 = vld [vmem:[%s2816_s9 + $0x8] sm:$0xff]  ;;  %v1899_v53 = vld [vmem:[%s2815_s8 + $0x10] sm:$0xff] }
 0x2f6   : > { %1328 = vmatpush.bf16.msrb.mxu3 %v1894_v32 }
 0x2f7   : > { %v971_v55 = vpack.c.bf16 %v970_v54, %v970_v54  ;;  %v1898_v54 = vld [vmem:[%s2815_s8 + $0x8] sm:$0xff] }
 0x2f9   : > { %1766 = vmatmul.msk.bf16.vlgmr.msrb.gmra.mxu2 %vm959_vm8, %v971_v55  ;;  %v1897_v55 = vld [vmem:[%s2815_s8] sm:$0xff] }
 0x2fa   : > { %1281 = vmatpush.bf16.msrb.mxu2 %v1892_v28  ;;  %1329 = vmatpush.bf16.msrb.mxu3 %v1893_v34 }
 0x34e   : > { %v1082_v56 = vpop.xlane.xlu2 %1081 }
 0x34f   : > { %2028 = vrcp.f32 %v1082_v56 }
 0x355   : > { %v2029_v57 = vpop.eup %2028  ;;  %v1022_v58 = vpop.xlane.xlu1 %1021 }
 0x356   : > { %v1084_v59 = vmul.f32 %v2029_v57, %v2021_v41  ;;  %2030 = vrcp.f32 %v1022_v58 }
 0x358   : > { %v1085_v60 = vpack.c.bf16 %v1084_v59, %v1084_v59 }
 0x35a   : > { %1770 = vmatmul.msk.bf16.vlgmr.msra.gmra.mxu2 %vm959_vm8, %v1085_v60 }
 0x35c   : > { %v2031_v61 = vpop.eup %2030 }
 0x35d   : > { %v1024_v62 = vmul.f32 %v2031_v61, %v2023_v43 }
 0x35f   : > { %v1025_v63 = vpack.c.bf16 %v1024_v62, %v1024_v62 }
 0x361   : > { %1768 = vmatmul.msk.bf16.vlgmr.msrb.gmra.mxu0 %vm959_vm8, %v1025_v63 }
 0x365   : > { %v1142_v1 = vpop.xlane.xlu1 %1141 }
 0x366   : > { %2032 = vrcp.f32 %v1142_v1 }
 0x36c   : > { %v2033_v2 = vpop.eup %2032 }
 0x36d   : > { %v1144_v3 = vmul.f32 %v2033_v2, %v2025_v51  ;;  %v1901_v51 = vld [vmem:[%s2815_s8 + $0x20] sm:$0xff] }
 0x36f   : > { %v1145_v4 = vpack.c.bf16 %v1144_v3, %v1144_v3 }
 0x371   : > { %1772 = vmatmul.msk.bf16.vlgmr.msra.gmra.mxu0 %vm959_vm8, %v1145_v4 }
 0x37c   : > { %v988_v5 = vpop.f32.mrf.mxu2 }
 0x37d   : > { %992 = vst.msk [vmem:[#allocation2] sm:$0xff] %vm939_vm7, %v988_v5 }
 0x384   : > { %v990_v6 = vpop.f32.mrf.mxu2 }
 0x3dd   : > { %v1106_v7 = vpop.f32.mrf.mxu2 }
 0x3de   : > { %v1038_v8 = vpop.f32.mrf.mxu0  ;;  %1111 = vrot.lane.b32.xlu1 %v1106_v7, %s2335_s20  ;;  %s2739_s20 = scalar_lea.sflag [#allocation14], %s1441_s14 }
 0x3df   : > { %1043 = vrot.lane.b32.xlu2 %v1038_v8, %s2336_s10  ;;  %s2204_s10 = sshra.s32 %s1476_s1, 4  ;;  %s2205_s10 = int_to_ptr.hbm [resolvable:$true] %s2204_s10 }
 0x3e0   : > { %p2211_p3 = scmp.lt.s32.totalorder %s2205_s10, %s2824_s17 }
 0x3e5   : > { %v1108_v9 = vpop.f32.mrf.mxu2 }
 0x3e6   : > { %v1040_v10 = vpop.f32.mrf.mxu0 }
 0x3ee   : > { %v1158_v11 = vpop.f32.mrf.mxu0 }
 0x3ef   : > { %1163 = vrot.lane.b32.xlu0 %v1158_v11, %s2337_s11  ;;  %s2206_s11 = scalar_lea.hbm %s2205_s10, 8 }
 0x3f0   : > { %p2207_p0 = scmp.ne.s32.totalorder %s2205_s10, %s2206_s11  ;;  %p2212_p4 = scmp.lt.s32.totalorder %s2210_s29, %s2206_s11 }
 0x3f2   : > { %p2208_p1 = pnand %p2207_p0, %p2473_p5  ;;  %p2213_p7 = por %p2212_p4, %p2211_p3 }
 0x3f4   : > { %p2209_p2 = pneg %p2208_p1 }
 0x3f6   : > { %v1160_v12 = vpop.f32.mrf.mxu0  ;;  %p2214_p8 = pnand %p2213_p7, %p2209_p2 }
 0x439   : > { %v1044_v15 = vpop.permute.xlu2 %1043 }
 0x43a   : > { %1047 = vst.msk [vmem:[#allocation2] sm:$0xff] %vm1046_vm9, %v1044_v15 }
 0x450   : > { %v1112_v18 = vpop.permute.xlu1 %1111 }
 0x451   : > { %1115 = vst.msk [vmem:[#allocation2] sm:$0xff] %vm1114_vm10, %v1112_v18 }
 0x461   : > { %v1164_v19 = vpop.permute.xlu0 %1163 }
 0x462   : > { %1167 = vst.msk [vmem:[#allocation2] sm:$0xff] %vm1166_vm11, %v1164_v19 }
 0x469   : > { %v1168_v20 = vld [vmem:[#allocation2] sm:$0xff] }
 0x46a   : > { %v1169_v21 = vpack.c.bf16 %v1168_v20, %v1168_v20 }
 0x46c   : > { %1789 = vmatmul.msk.bf16.vlgmr.msra.gmra.mxu1 %vm666_vm0, %v1169_v21 }
 0x4e9   : > { %v1214_v22 = vpop.f32.mrf.mxu1 }
 0x4ea   : > { %v2672_v23 = vadd.f32 %v1214_v22, %v2540_v0  ;;  %v1891_v0 = vld [vmem:[%s2814_s7 + $0x10] sm:$0xff] }
 0x4eb   : > { %1282 = vmatpush.bf16.msrb.mxu2 %v1891_v0 }
 0x4ec   : > { %v1220_v24 = vmul.f32 %v2672_v23, %v2672_v23 }
 0x4ee   : > { %v1221_v25 = vsel %vm666_vm0, %v1220_v24, 0.0 }
 0x4ef   : > { %1222 = vadd.xlane.f32.xlu2 %v1221_v25  ;;  %1283 = vmatpush.bf16.msrb.mxu2 %v1890_v31 }
 0x4f1   : > { %v1216_v27 = vpop.f32.mrf.mxu1 }
 0x4f3   : > { %1284 = vmatpush.bf16.msrb.mxu2 %v1889_v33 }
 0x562   : > { %v1223_v35 = vpop.xlane.xlu2 %1222 }
 0x563   : > { %v1224_v36 = vmul.f32 %v1223_v35, %v2596_v26  ;;  %v1904_v26 = vld [vmem:[%s2815_s8 + $0x38] sm:$0xff] }
 0x564   : > { %1421 = vmatpush.bf16.msrb.mxu0 %v1904_v26 }
 0x565   : > { %v1225_v37 = vadd.f32 1e-05, %v1224_v36 }
 0x567   : > { %2034 = vrsqrt.f32 %v1225_v37  ;;  %vm1232_vm13 = vweird.f32 %v1225_v37 }
 0x568   : > { %1422 = vmatpush.bf16.msrb.mxu0 %v1903_v49 }
 0x56c   : > { %1423 = vmatpush.bf16.msrb.mxu0 %v1902_v50 }
 0x56d   : > { %v2035_v38 = vpop.eup %2034 }
 0x56e   : > { %v1227_v39 = vmul.f32 %v2035_v38, %v1225_v37  ;;  %vm1233_vm12 = vweird.f32 %v2035_v38 }
 0x56f   : > { %vm1234_vm14 = vmor %vm1232_vm13, %vm1233_vm12 }
 0x570   : > { %v1228_v40 = vmul.f32 %v2035_v38, %v1227_v39  ;;  %1424 = vmatpush.bf16.msrb.mxu0 %v1901_v51 }
 0x572   : > { %v1229_v41 = vmul.f32 0.5, %v1228_v40 }
 0x574   : > { %v1230_v42 = vsub.f32 1.5, %v1229_v41  ;;  %1425 = vmatpush.bf16.msrb.mxu0 %v1900_v52 }
 0x576   : > { %v1231_v43 = vmul.f32 %v2035_v38, %v1230_v42 }
 0x578   : > { %v1235_v45 = vsel %vm1234_vm14, %v2035_v38, %v1231_v43  ;;  %1426 = vmatpush.bf16.msrb.mxu0 %v1899_v53 }
 0x579   : > { %v1236_v46 = vmul.f32 %v1235_v45, %v2672_v23 }
 0x57b   : > { %v1240_v47 = vmul.f32 %v2013_v44, %v1236_v46 }
 0x57c   : > { %1427 = vmatpush.bf16.msrb.mxu0 %v1898_v54 }
 0x57d   : > { %v1241_v48 = vpack.c.bf16 %v1240_v47, %v1240_v47 }
 0x57f   : > { %1806 = vmatmul.msk.bf16.vlgmr.msrb.gmra.mxu2 %vm666_vm0, %v1241_v48  ;;  %1823 = vmatmul.msk.bf16.vlgmr.msrb.gmra.mxu3 %vm666_vm0, %v1241_v48 }
 0x580   : > { %1428 = vmatpush.bf16.msrb.mxu0 %v1897_v55 }
 0x602   : > { %v1286_v56 = vpop.f32.mrf.mxu2  ;;  %v1331_v57 = vpop.f32.mrf.mxu3 }
 0x603   : > { %v1824_v58 = vmul.f32 -1.442695, %v1286_v56 }
 0x605   : > { %2036 = vpow2.f32 %v1824_v58 }
 0x60a   : > { %v1288_v59 = vpop.f32.mrf.mxu2  ;;  %v1333_v60 = vpop.f32.mrf.mxu3 }
 0x60b   : > { %v2037_v61 = vpop.eup %2036 }
 0x60c   : > { %v1338_v62 = vadd.f32 1.0, %v2037_v61 }
 0x60e   : > { %2038 = vrcp.f32 %v1338_v62  ;;  %v1350_v3 = vand.u32 2147483648, %v1338_v62  ;;  %v1348_v5 = vand.u32 2147483647, %v1338_v62  ;;  %vm1344_vm1 = vweird.f32 %v1338_v62 }
 0x610   : > { %v1351_v7 = vor.u32 1.1754944e-38, %v1350_v3  ;;  %vm1349_vm3 = vcmp.eq.f32.partialorder %v1348_v5, 8.507059e+37 }
 0x614   : > { %v2039_v63 = vpop.eup %2038 }
 0x615   : > { %v1340_v1 = vmul.f32 %v2039_v63, %v1338_v62  ;;  %vm1345_vm15 = vweird.f32 %v2039_v63 }
 0x616   : > { %vm1346_vm2 = vmor %vm1344_vm1, %vm1345_vm15 }
 0x617   : > { %v1341_v2 = vsub.f32 1.0, %v1340_v1 }
 0x619   : > { %v1342_v4 = vmul.f32 %v2039_v63, %v1341_v2 }
 0x61b   : > { %v1343_v6 = vadd.f32 %v2039_v63, %v1342_v4 }
 0x61d   : > { %v1347_v8 = vsel %vm1346_vm2, %v2039_v63, %v1343_v6 }
 0x61e   : > { %v1352_v9 = vsel %vm1349_vm3, %v1351_v7, %v1347_v8 }
 0x61f   : > { %v1354_v10 = vmul.f32 %v1352_v9, %v1286_v56 }
 0x621   : > { %v1355_v11 = vmul.f32 %v1354_v10, %v1331_v57 }
 0x623   : > { %v1356_v12 = vpack.c.bf16 %v1355_v11, %v1355_v11 }
 0x625   : > { %1429 = vmatmul.bf16.vlgmr.msrb.gmra.mxu0 %v1356_v12 }
 0x626   : > { %2217 = shalt.err (!%p2214_p8)
}
 0x627   : > { %1926 = dma.vmem_to_hbm [thread:$0]  (%p2473_p5), %s1474_s27, 128, %s1476_s1, %s2739_s20  }
 0x628   : > { %s2866_s21 = scalar_lea.vmem [#allocation15], %s2617_s23  ;;  %s1485_s0 = scalar_lea.hbm %s2825_s18, %s2731_s16 }
 0x629   : > { %s1487_s14 = sshll.u32 %s2866_s21, 4  ;;  %s1489_s24 = sshll.u32 %s1485_s0, 4  ;;  %s1488_s14 = int_to_ptr.vmem [resolvable:$true] %s1487_s14  ;;  %s1490_s24 = int_to_ptr.hbm [resolvable:$true] %s1489_s24 }
 0x62a   : > { %s2232_s10 = sshra.s32 %s1490_s24, 4  ;;  %s2238_s27 = scalar_lea.hbm %s2825_s18, 16  ;;  %s2233_s10 = int_to_ptr.hbm [resolvable:$true] %s2232_s10 }
 0x62b   : > { %s2234_s11 = scalar_lea.hbm %s2233_s10, 8  ;;  %p2239_p12 = scmp.lt.s32.totalorder %s2233_s10, %s2825_s18 }
 0x62c   : > { %p2235_p9 = scmp.ne.s32.totalorder %s2233_s10, %s2234_s11  ;;  %p2240_p13 = scmp.lt.s32.totalorder %s2238_s27, %s2234_s11 }
 0x62e   : > { %p2236_p10 = pnand %p2235_p9, %p2473_p5  ;;  %p2241_p0 = por %p2240_p13, %p2239_p12 }
 0x630   : > { %p2237_p11 = pneg %p2236_p10 }
 0x632   : > { %p2242_p1 = pnand %p2241_p0, %p2237_p11 }
 0x634   : > { %2245 = shalt.err (!%p2242_p1)
}
 0x635   : > { %1927 = dma.vmem_to_hbm [thread:$0]  (%p2473_p5), %s1488_s14, 128, %s1490_s24, %s2739_s20  }
 0x636   : > { %s2867_s0 = sld [smem:[#allocation34_spill]]  ;;  %s643_s25 = scalar_lea.vmem [#allocation12], %s2617_s23 }
 0x637   : > { %s1459_s3 = sshll.u32 %s643_s25, 4  ;;  %s2868_s10 = sand.u32 1, %s2316_s28   ;;  %s1460_s3 = int_to_ptr.vmem [resolvable:$true] %s1459_s3 }
 0x638   : > { %s1437_s11 = scalar_lea.sflag [#allocation5], %s2868_s10 }
 0x63c   : > { %s1457_s29 = scalar_lea.hbm %s2867_s0, %s2731_s16  ;;  %s2266_s20 = scalar_lea.hbm %s2867_s0, 16 }
 0x63d   : > { %s1461_s1 = sshll.u32 %s1457_s29, 4  ;;  %s1462_s1 = int_to_ptr.hbm [resolvable:$true] %s1461_s1 }
 0x63e   : > { %s2260_s27 = sshra.s32 %s1462_s1, 4  ;;  %s2261_s27 = int_to_ptr.hbm [resolvable:$true] %s2260_s27 }
 0x63f   : > { %s2262_s21 = scalar_lea.hbm %s2261_s27, 8  ;;  %p2267_p7 = scmp.lt.s32.totalorder %s2261_s27, %s2867_s0 }
 0x640   : > { %p2263_p2 = scmp.ne.s32.totalorder %s2261_s27, %s2262_s21  ;;  %p2268_p8 = scmp.lt.s32.totalorder %s2266_s20, %s2262_s21 }
 0x642   : > { %p2264_p3 = pnand %p2263_p2, %p2473_p5  ;;  %p2269_p9 = por %p2268_p8, %p2267_p7 }
 0x644   : > { %p2265_p4 = pneg %p2264_p3 }
 0x646   : > { %p2270_p10 = pnand %p2269_p9, %p2265_p4 }
 0x6a2   : > { %v1430_v13 = vpop.f32.mrf.mxu0 }
 0x6a3   : > { %v1434_v14 = vadd.f32 %v1430_v13, %v2672_v23 }
 0x6a5   : > { %1435 = vst.msk [vmem:[%s643_s25] sm:$0xff] %vm666_vm0, %v1434_v14 }
 0x6a6   : > { %2273 = shalt.err (!%p2270_p10)
}
 0x6a7   : > { %1925 = dma.vmem_to_hbm [thread:$0]  (%p2473_p5), %s1460_s3, 128, %s1462_s1, %s1437_s11  }
 0x6aa   : > { %v1432_v15 = vpop.f32.mrf.mxu0 }
 0x6ab PF: > { %s2869_s26 = sld [smem:[#allocation23_spill]] }
 0x6ac   : > { %s2870_s30 = sld [smem:[#allocation21_spill]] }
 0x6b1   : > { %p1967_p11 = scmp.ge.s32.totalorder %s2869_s26, 2 }
 0x6b2   : > { %s1501_s25 = sand.u32 1, %s2870_s30  }
 0x6b3   : > { %p1948_p12 = pnand %p1967_p11, %p2477_p6  ;;  %s1502_s10 = scalar_lea.sflag [#allocation5], %s1501_s25 }
 0x6b5   : > { %p1949_p13 = pneg %p1948_p12 }
 0x6b7   : > { %2303 = dma.done.wait (%p1949_p13), %s1502_s10, 128  }
 0x6b8   : > { %2305 = vsyncadd (%p1949_p13), %s1502_s10, 4294967168  ;;  %s2872_s27 = sadd.s32 4294967294, %s2869_s26  }
 0x6b9   : > { %s1511_s21 = sand.u32 1, %s2872_s27  }
 0x6ba   : > { %s1512_s16 = scalar_lea.sflag [#allocation14], %s1511_s21 }
 0x6bb   : > { %2307 = dma.done.wait (%p1949_p13), %s1512_s16, 256  }
 0x6bc   : > { %2309 = vsyncadd (%p1949_p13), %s1512_s16, 4294967040  ;;  %s2873_s30 = sld [smem:[#allocation24_spill]]  ;;  %s2876_s27 = smov %s2316_s28 }
 0x6bd   : > { %s2874_s3 = sld [smem:[#allocation22_spill]] }
 0x6be   : > { %s2875_s29 = sld [smem:[#allocation25_spill]] }
 0x6c2   : > { %p35_p5 = scmp.ge.s32.totalorder %s2873_s30, 4  }
 0x6c3   : > { %s2877_s28 = smov %s2874_s3 }
 0x6c4   :  { %37 = sbr.rel (!%p35_p5) target bundleno = 17 (0x11), region = 172 }
 0x6c9   :  { %1528 = vsyncpa [#allocation4], 1 }
 0x6ca   :  { %1530 = vsyncpa [#allocation4 + $0x1], 1 }
 0x6cb   :  { %1531 = vsyncpa [#allocation7], 1 }
 0x6cc   :  { %1532 = vsyncpa [#allocation10], 1 }
 0x6cd   :  { %1533 = vsyncpa [#allocation5], 1 }
 0x6ce   :  { %1535 = vsyncpa [#allocation5 + $0x1], 1 }
 0x6cf   :  { %1536 = vsyncpa [#allocation14], 1 }
 0x6d0   :  { %1538 = vsyncpa [#allocation14 + $0x1], 1 }

</bundles_post_ra>
